<compile_context>
chip_gen: v5e
topology: v5e:2x2
jax: 0.10.0
libtpu: 0.0.40
codegen_flags: <defaults>
</compile_context>

<pallas_src>
import math
import numpy as np
import jax
import jax.numpy as jnp
from jax import lax
from jax.experimental import pallas as pl
from jax.experimental.pallas import tpu as pltpu


def _round_up(x, m):
    return ((x + m - 1) // m) * m


# ----------------------------------------------------------------------------
# Pallas kernels:  D[b] = -(A[b] @ B[b]^T)   (NT matmul, f32 accumulation)
# ----------------------------------------------------------------------------
_NT_DIMS = (((1,), (1,)), ((), ()))  # contract last dim of both operands (NT)


def _neg_nt_matmul_kernel(a_ref, b_ref, o_ref):
    # Single-K-block fast path: no accumulator scratch, no init/finalize.
    prod = lax.dot_general(
        a_ref[...], b_ref[...],
        dimension_numbers=_NT_DIMS,
        preferred_element_type=jnp.float32,
    )
    o_ref[...] = (-prod).astype(o_ref.dtype)


def _neg_nt_matmul_acc_kernel(a_ref, b_ref, o_ref, acc_ref):
    # grid = (bags, M-tiles, N-tiles, K-tiles); reduction axis (K) last.
    @pl.when(pl.program_id(3) == 0)
    def _():
        acc_ref[...] = jnp.zeros_like(acc_ref)

    acc_ref[...] += lax.dot_general(
        a_ref[...], b_ref[...],
        dimension_numbers=_NT_DIMS,
        preferred_element_type=jnp.float32,
    )

    @pl.when(pl.program_id(3) == pl.num_programs(3) - 1)
    def _():
        # negate + cast once at the final store (epilogue stays in f32).
        o_ref[...] = (-acc_ref[...]).astype(o_ref.dtype)


def fast_distance_batched(im, rc, *, tm=None, tn=None, tk=None,
                          out_dtype=jnp.float32):
    """Batched Pallas equivalent of  torch.mm(A, B.t()) * -1  per bag.

    im: (B, M, K), rc: (B, N, K)  ->  (B, M, N) = -(im @ rc^T) per bag.
    Inputs are zero-padded to tile-aligned shapes (padding contributes 0 to the
    dot products and is sliced off the output), so argsort semantics are exact.
    """
    B, M, K = im.shape
    B2, N, K2 = rc.shape
    assert B == B2 and K == K2, "bag count / embedding dims must match"

    # Keep bf16 in bf16 (halves HBM traffic; f32 accumulation either way),
    # otherwise compute in f32.
    if im.dtype == jnp.bfloat16 and rc.dtype == jnp.bfloat16:
        compute_dtype = jnp.bfloat16
    else:
        compute_dtype = jnp.float32
    im = im.astype(compute_dtype)
    rc = rc.astype(compute_dtype)

    # Bounded, MXU-friendly default tiles (256-aligned M/N when large enough —
    # fills the 2x256^2 MXU on v6e/v7x and stays 128-aligned for v5e; tk<=1024
    # keeps the double-buffered working set a few MiB, safe under v7x VMEM).
    TM_MAX, TN_MAX, TK_MAX = 256, 256, 1024
    if tm is None:
        tm = TM_MAX if M >= TM_MAX else _round_up(M, 8)
    if tn is None:
        tn = TN_MAX if N >= TN_MAX else _round_up(N, 128)
    if tk is None:
        tk = TK_MAX if K >= TK_MAX else _round_up(K, 128)
    assert tm % 8 == 0 and tn % 128 == 0 and tk % 128 == 0, \
        "tiles must be (8,128)-aligned"

    M_pad, N_pad, K_pad = _round_up(M, tm), _round_up(N, tn), _round_up(K, tk)
    if (M_pad, K_pad) != (M, K):
        im = jnp.pad(im, ((0, 0), (0, M_pad - M), (0, K_pad - K)))
    if (N_pad, K_pad) != (N, K):
        rc = jnp.pad(rc, ((0, 0), (0, N_pad - N), (0, K_pad - K)))

    k_steps = K_pad // tk
    grid = (B, M_pad // tm, N_pad // tn, k_steps)

    if k_steps == 1:
        kernel = _neg_nt_matmul_kernel
        scratch = []
    else:
        kernel = _neg_nt_matmul_acc_kernel
        scratch = [pltpu.VMEM((tm, tn), jnp.float32)]

    # VMEM budget: 2x double-buffered input blocks + 2x output block + acc,
    # with headroom; capped well under v7x's 64 MiB physical VMEM.
    bpe_in = 2 if compute_dtype == jnp.bfloat16 else 4
    bpe_out = jnp.dtype(out_dtype).itemsize
    vmem_bytes = (2 * (tm * tk + tn * tk) * bpe_in
                  + 2 * tm * tn * bpe_out
                  + (tm * tn * 4 if k_steps > 1 else 0))
    vmem_limit = min(max(3 * vmem_bytes + (8 << 20), 32 << 20), 48 << 20)

    cost = pl.CostEstimate(
        flops=2 * B * M_pad * N_pad * K_pad,
        transcendentals=0,
        bytes_accessed=(B * M_pad * K_pad * bpe_in
                        + B * N_pad * K_pad * bpe_in
                        + B * M_pad * N_pad * bpe_out),
    )

    out = pl.pallas_call(
        kernel,
        out_shape=jax.ShapeDtypeStruct((B, M_pad, N_pad), out_dtype),
        grid_spec=pltpu.PrefetchScalarGridSpec(
            num_scalar_prefetch=0,
            grid=grid,
            in_specs=[
                pl.BlockSpec((None, tm, tk), lambda b, i, j, k: (b, i, k)),
                pl.BlockSpec((None, tn, tk), lambda b, i, j, k: (b, j, k)),
            ],
            out_specs=pl.BlockSpec((None, tm, tn), lambda b, i, j, k: (b, i, j)),
            scratch_shapes=scratch,
        ),
        compiler_params=pltpu.CompilerParams(
            dimension_semantics=("parallel", "parallel", "parallel", "arbitrary"),
            vmem_limit_bytes=vmem_limit,
        ),
        cost_estimate=cost,
    )(im, rc)

    return out[:, :M, :N]


def fast_distance(A, B, **kw):
    """Pallas equivalent of  torch.mm(A, B.t()) * -1  (A:(M,K), B:(N,K))."""
    return fast_distance_batched(A[None], B[None], **kw)[0]


# ----------------------------------------------------------------------------
# Trijoint module (metric bookkeeping; forward + calculate_metrics semantics)
# ----------------------------------------------------------------------------
class Trijoint:
    def __init__(self, opt, with_classif=False, mode="eval"):
        self.mode = mode
        self.with_classif = with_classif
        self.nb_bags_retrieval = opt["nb_bags"]
        self.nb_matchs_per_bag = opt["nb_matchs_per_bag"]
        self.nb_matchs_expected = self.nb_bags_retrieval * self.nb_matchs_per_bag
        self.nb_matchs_saved = 0
        self.ignore_index = None if opt.get("keep_background", False) else 0
        # in-memory stand-in for utils.save_activation / load_activation
        self._activations = {"image": [], "recipe": []}

    def forward(self, cri_out, net_out, batch):
        out = {}
        # TODO(synk): with_classif accuracy path (top-k on host tensors) is not
        # a kernel-relevant op; omitted for this synthetic module.
        if self.mode == "eval":
            batch_size = len(batch["image"]["index"])
            for i in range(batch_size):
                if self.nb_matchs_saved == self.nb_matchs_expected:
                    continue
                if batch["match"][i][0] == -1:
                    continue
                self._activations["image"].append(
                    np.asarray(net_out["image_embedding"][i])
                )
                self._activations["recipe"].append(
                    np.asarray(net_out["recipe_embedding"][i])
                )
                self.nb_matchs_saved += 1
        return out

    def calculate_metrics(self):
        final_nb_bags = math.floor(self.nb_matchs_saved / self.nb_matchs_per_bag)
        n = self.nb_matchs_per_bag

        list_med_im2recipe, list_med_recipe2im = [], []
        r1_i2r, r5_i2r, r10_i2r = [], [], []
        r1_r2i, r5_r2i, r10_r2i = [], [], []

        if final_nb_bags > 0:
            total = final_nb_bags * n
            im_all = jnp.asarray(
                np.stack(self._activations["image"][:total]), jnp.float32
            ).reshape(final_nb_bags, n, -1)
            rc_all = jnp.asarray(
                np.stack(self._activations["recipe"][:total]), jnp.float32
            ).reshape(final_nb_bags, n, -1)

            # --- Pallas hot path: one batched launch for ALL bags, one
            #     device->host transfer (instead of per-bag launch + sync) ---
            distances_all = np.asarray(
                jax.block_until_ready(fast_distance_batched(im_all, rc_all))
            )

            for b in range(final_nb_bags):
                distances = distances_all[b]
                # TODO(synk): argsort-based rank extraction kept in numpy to
                # match reference semantics exactly.
                im2recipe = np.argsort(distances, axis=0)
                recipe2im = np.argsort(distances, axis=1)

                c1i = c5i = c10i = c1r = c5r = c10r = 0
                med_i2r, med_r2i = [], []
                for i in range(n):
                    pos_im2recipe = im2recipe[:, i].tolist().index(i)
                    pos_recipe2im = recipe2im[i, :].tolist().index(i)
                    c1i += pos_im2recipe == 0
                    c5i += pos_im2recipe <= 4
                    c10i += pos_im2recipe <= 9
                    c1r += pos_recipe2im == 0
                    c5r += pos_recipe2im <= 4
                    c10r += pos_recipe2im <= 9
                    med_i2r.append(pos_im2recipe)
                    med_r2i.append(pos_recipe2im)

                list_med_im2recipe.append(np.median(med_i2r))
                list_med_recipe2im.append(np.median(med_r2i))
                r1_i2r.append(c1i / n); r5_i2r.append(c5i / n); r10_i2r.append(c10i / n)
                r1_r2i.append(c1r / n); r5_r2i.append(c5r / n); r10_r2i.append(c10r / n)

        out = {
            "med_im2recipe_mean": float(np.mean(list_med_im2recipe)),
            "med_recipe2im_mean": float(np.mean(list_med_recipe2im)),
            "recall_at_1_im2recipe_mean": float(np.mean(r1_i2r)),
            "recall_at_5_im2recipe_mean": float(np.mean(r5_i2r)),
            "recall_at_10_im2recipe_mean": float(np.mean(r10_i2r)),
            "recall_at_1_recipe2im_mean": float(np.mean(r1_r2i)),
            "recall_at_5_recipe2im_mean": float(np.mean(r5_r2i)),
            "recall_at_10_recipe2im_mean": float(np.mean(r10_r2i)),
        }
        self._activations = {"image": [], "recipe": []}
        self.nb_matchs_saved = 0
        return out


# ----------------------------------------------------------------------------
if __name__ == "__main__":
    key = jax.random.PRNGKey(0)
    nb_bags, nb_matchs_per_bag, emb_dim = 2, 8, 32
    total = nb_bags * nb_matchs_per_bag

    k_img, k_rcp, k_big = jax.random.split(key, 3)
    image_emb = jax.random.normal(k_img, (total, emb_dim), jnp.float32)
    recipe_emb = jax.random.normal(k_rcp, (total, emb_dim), jnp.float32)

    # --- direct kernel correctness checks against pure-JAX references ---
    # batched path (all bags in one launch; single-K-tile fast path)
    im_b = image_emb.reshape(nb_bags, nb_matchs_per_bag, emb_dim)
    rc_b = recipe_emb.reshape(nb_bags, nb_matchs_per_bag, emb_dim)
    d_pal_b = jax.block_until_ready(fast_distance_batched(im_b, rc_b))
    d_ref_b = -jnp.einsum("bmk,bnk->bmn", im_b, rc_b)
    np.testing.assert_allclose(np.asarray(d_pal_b), np.asarray(d_ref_b),
                               rtol=1e-5, atol=1e-5)

    # 2-D path (matches torch.mm(A, B.t()) * -1)
    d_pal = jax.block_until_ready(
        fast_distance(image_emb[:nb_matchs_per_bag], recipe_emb[:nb_matchs_per_bag])
    )
    d_ref = -(image_emb[:nb_matchs_per_bag] @ recipe_emb[:nb_matchs_per_bag].T)
    np.testing.assert_allclose(np.asarray(d_pal), np.asarray(d_ref),
                               rtol=1e-5, atol=1e-5)

    # accumulator (multi-K-tile) path: force tk=128 with K=256
    ka, kb = jax.random.split(k_big)
    a_big = jax.random.normal(ka, (2, 8, 256), jnp.float32)
    b_big = jax.random.normal(kb, (2, 8, 256), jnp.float32)
    d_acc = jax.block_until_ready(fast_distance_batched(a_big, b_big, tk=128))
    d_acc_ref = -jnp.einsum("bmk,bnk->bmn", a_big, b_big)
    np.testing.assert_allclose(np.asarray(d_acc), np.asarray(d_acc_ref),
                               rtol=1e-5, atol=1e-5)

    # --- end-to-end metric flow ---
    opt = {"nb_bags": nb_bags, "nb_matchs_per_bag": nb_matchs_per_bag}
    metric = Trijoint(opt, with_classif=False, mode="eval")
    net_out = {"image_embedding": image_emb, "recipe_embedding": recipe_emb}
    batch = {
        "image": {"index": list(range(total))},
        "recipe": {"index": list(range(total))},
        "match": [[1] for _ in range(total)],
    }
    metric.forward({}, net_out, batch)
    results = metric.calculate_metrics()
    assert set(results) and all(np.isfinite(v) for v in results.values())

    print("KERNEL_OK")
</pallas_src>

<mosaic_0001>
module attributes {stable_mosaic.version = 11 : i64} {
  func.func @_neg_nt_matmul_kernel(%arg0: i32, %arg1: i32, %arg2: i32, %arg3: i32, %arg4: memref<1x8x128xf32, #tpu.memory_space<vmem>>, %arg5: memref<1x128x128xf32, #tpu.memory_space<vmem>>, %arg6: memref<1x8x128xf32, #tpu.memory_space<vmem>>) attributes {dimension_semantics = [#tpu.dimension_semantics<parallel>, #tpu.dimension_semantics<parallel>, #tpu.dimension_semantics<parallel>, #tpu.dimension_semantics<arbitrary>], iteration_bounds = array<i64: 2, 1, 1, 1>, scalar_prefetch = 0 : i64, scratch_operands = 0 : i64, tpu.core_type = #tpu.core_type<tc>, window_params = [{transform_indices = @transform_0, window_bounds = array<i64: 1, 8, 128>}, {transform_indices = @transform_1, window_bounds = array<i64: 1, 128, 128>}, {transform_indices = @transform_2, window_bounds = array<i64: 1, 8, 128>}]} {
    %c0 = arith.constant 0 : index
    %c0_0 = arith.constant 0 : index
    %c0_1 = arith.constant 0 : index
    %0 = vector.load %arg4[%c0, %c0_0, %c0_1] : memref<1x8x128xf32, #tpu.memory_space<vmem>>, vector<1x8x128xf32>
    %1 = vector.shape_cast %0 : vector<1x8x128xf32> to vector<8x128xf32>
    %c0_2 = arith.constant 0 : index
    %c0_3 = arith.constant 0 : index
    %c0_4 = arith.constant 0 : index
    %2 = vector.load %arg5[%c0_2, %c0_3, %c0_4] : memref<1x128x128xf32, #tpu.memory_space<vmem>>, vector<1x128x128xf32>
    %3 = vector.shape_cast %2 : vector<1x128x128xf32> to vector<128x128xf32>
    %cst = arith.constant dense<0.000000e+00> : vector<8x128xf32>
    %4 = tpu.matmul %1, %3, %cst {dimension_numbers = #tpu.dot_dimension_numbers<[1], [1], [0], [0], [0, 0, 1, 0], [], []>} : vector<8x128xf32>, vector<128x128xf32>, vector<8x128xf32> -> vector<8x128xf32>
    %cst_5 = arith.constant 0.000000e+00 : f32
    %5 = vector.broadcast %cst_5 : f32 to vector<8x128xf32>
    %6 = arith.subf %5, %4 : vector<8x128xf32>
    %c0_6 = arith.constant 0 : index
    %c0_7 = arith.constant 0 : index
    %c0_8 = arith.constant 0 : index
    %7 = vector.load %arg6[%c0_6, %c0_7, %c0_8] : memref<1x8x128xf32, #tpu.memory_space<vmem>>, vector<1x8x128xf32>
    %8 = vector.shape_cast %7 : vector<1x8x128xf32> to vector<8x128xf32>
    %9 = vector.shape_cast %6 : vector<8x128xf32> to vector<1x8x128xf32>
    tpu.vector_store %arg6[%c0_6, %c0_7, %c0_8], %9 {strides = array<i32>} : memref<1x8x128xf32, #tpu.memory_space<vmem>>, vector<1x8x128xf32>,
    return
  }
  func.func @transform_0(%arg0: i32, %arg1: i32, %arg2: i32, %arg3: i32) -> (i32, i32, i32) {
    %c0_i32 = arith.constant 0 : i32
    return %arg0, %arg1, %arg3 : i32, i32, i32
  }
  func.func @transform_1(%arg0: i32, %arg1: i32, %arg2: i32, %arg3: i32) -> (i32, i32, i32) {
    %c0_i32 = arith.constant 0 : i32
    return %arg0, %arg2, %arg3 : i32, i32, i32
  }
  func.func @transform_2(%arg0: i32, %arg1: i32, %arg2: i32, %arg3: i32) -> (i32, i32, i32) {
    %c0_i32 = arith.constant 0 : i32
    return %arg0, %arg1, %arg2 : i32, i32, i32
  }
}

</mosaic_0001>

<bundles_post_ra>
// kernel: tpu_custom_call.1
= control target key start
LH: loop header
LB: loop body
LE: loop exit
PB: predicated region body
PF: predicated region fallthrough
CT: control target
= control target key end

     0   :  { %7 = vsyncpa [#allocation3], 0  ;;  %s837_s0 = inlined_call_operand.hbm [shape: f32[2,8,128], index: 0, kind: input, shape index: {}]   ;;  %s838_s1 = inlined_call_operand.hbm [shape: f32[2,128,128], index: 1, kind: input, shape index: {}]   ;;  %s839_s2 = inlined_call_operand.hbm [shape: f32[2,8,128], index: 2, kind: output, shape index: {}]  }
   0x1   :  { %9 = vsyncpa [#allocation3 + $0x1], 0 }
   0x2   :  { %10 = vsyncpa [#allocation6], 0 }
   0x3   :  { %12 = vsyncpa [#allocation6 + $0x1], 0 }
   0x4   :  { %13 = vsyncpa [#allocation4], 0 }
   0x5   :  { %15 = vsyncpa [#allocation4 + $0x1], 0  ;;  %s668_s9 = smov 0   ;;  %s670_s10 = smov 0  }
   0x6   :  { %s672_s11 = smov 0   ;;  %s674_s12 = smov 0  }
   0x7   :  { %s676_s13 = smov 0   ;;  %s678_s14 = smov 0  }
   0x8 LB: > { %s416_s15 = sadd.s32 4294967295, %s649_s14   ;;  %s417_s16 = sadd.s32 4294967294, %s649_s14   ;;  %s649_s14 = sphi %s678_s14, %s21_s14   ;;  %s645_s13 = sphi %s676_s13, %s849_s13   ;;  %s641_s12 = sphi %s674_s12, %s848_s12   ;;  %s637_s11 = sphi %s672_s11, %s847_s11   ;;  %s633_s10 = sphi %s670_s10, %s846_s10   ;;  %s629_s9 = sphi %s668_s9, %s845_s9  }
   0x9   : > { %s47_s17 = sadd.s32 1, %s645_s13  ;;  %s58_s18 = sadd.s32 1, %s637_s11 }
   0xa   : > { %p49_p0 = scmp.ge.s32.totalorder %s47_s17, 2  ;;  %p65_p1 = scmp.ne.s32.totalorder %s637_s11, %s633_s10 }
   0xb   : > { %p66_p2 = scmp.eq.s32.totalorder %s649_s14, 0  ;;  %p71_p3 = scmp.ne.s32.totalorder %s633_s10, %s629_s9 }
   0xc   : > { %s851_s17 = smov (%p49_p0, %s47_s17), 0  ;;  %p72_p5 = scmp.eq.s32.totalorder %s416_s15, 0 }
   0xd   : > { %p709_p4 = por %p66_p2, %p65_p1  ;;  %s51_s20 = ssub.s32 %s645_s13, %s851_s17 }
   0xe   : > { %p129_p6 = scmp.eq.s32.totalorder %s416_s15, 1  ;;  %p56_p7 = scmp.eq.s32.totalorder %s51_s20, 0 }
   0xf   : > { %p715_p8 = por %p72_p5, %p71_p3  ;;  %p135_p10 = scmp.eq.s32.totalorder %s417_s16, 1 }
  0x10   : > { %p719_p9 = por %p129_p6, %p65_p1  ;;  %p419_p12 = scmp.ge.s32.totalorder %s649_s14, 2 }
  0x11   : > { %s724_s23 = scalar_select %p56_p7, %s637_s11, %s58_s18  }
  0x12   : > { %p726_p11 = por %p135_p10, %p71_p3  ;;  %p451_p13 = scmp.lt.s32.totalorder %s649_s14, 2 }
  0x13   : > { %s733_s25 = sand.u32 1, %s637_s11   ;;  %s421_s27 = sshll.u32 %s645_s13, 3 }
  0x14   : > { %s420_s26 = sshll.u32 %s733_s25, 3  ;;  %s165_s30 = scalar_lea.hbm %s837_s0, %s421_s27 }
  0x15   : > { %s159_s3 = scalar_lea.vmem [#allocation2], %s420_s26  ;;  %s167_s5 = sshll.u32 %s165_s30, 4  ;;  %s168_s5 = int_to_ptr.hbm [resolvable:$true] %s167_s5 }
  0x16   : > { %s169_s4 = sshll.u32 %s159_s3, 4  ;;  %p742_p0 = pnand %p451_p13, %p709_p4  ;;  %s170_s4 = int_to_ptr.vmem [resolvable:$true] %s169_s4 }
  0x17   : > { %p425_p1 = scmp.ge.s32.totalorder %s649_s14, 1  ;;  %p199_p2 = scmp.lt.s32.totalorder %s649_s14, 3 }
  0x18   : > { %s156_s7 = scalar_lea.sflag [#allocation3], %s733_s25  ;;  %s422_s8 = sshll.u32 %s733_s25, 7 }
  0x19   : > { %443 = dma.hbm_to_vmem [thread:$0]  (!%p742_p0), %s168_s5, 128, %s170_s4, %s156_s7  }
  0x1a   : > { %p200_p3 = pnand %p425_p1, %p199_p2  ;;  %s433_s15 = sshll.u32 %s645_s13, 7 }
  0x1b   : > { %s188_s20 = scalar_lea.hbm %s838_s1, %s433_s15  ;;  %s180_s26 = scalar_lea.vmem [#allocation5], %s422_s8 }
  0x1c   : > { %s191_s19 = sshll.u32 %s180_s26, 4  ;;  %s189_s27 = sshll.u32 %s188_s20, 4  ;;  %s192_s19 = int_to_ptr.vmem [resolvable:$true] %s191_s19  ;;  %s190_s27 = int_to_ptr.hbm [resolvable:$true] %s189_s27 }
  0x1d   : > { %s177_s28 = scalar_lea.sflag [#allocation6], %s733_s25  ;;  %s651_s29 = smov 128  }
  0x1e   : > { %s652_s30 = smov 8   ;;  %203 = sbr.rel (%p200_p3) target bundleno = 234 (0xea), region = 28 }
  0x1f   : > { %446 = dma.hbm_to_vmem [thread:$0]  (!%p742_p0), %s190_s27, 2048, %s192_s19, %s177_s28, %s651_s29, %s651_s29, %s652_s30  }
  0x20   : > { %s760_s3 = sand.u32 (!%p200_p3), 1, %s633_s10  }
  0x21   : > { %s426_s4 = sshll.u32 (!%p200_p3), %s760_s3, 3  ;;  %s206_s5 = scalar_lea.sflag (!%p200_p3), [#allocation3], %s760_s3 }
  0x22   : > { %s766_s7 = scalar_lea.vmem (!%p200_p3), [#allocation2], %s426_s4 }
  0x23   : > { %616 = dma.done.wait (%p715_p8), %s206_s5, 128  }
  0x24   : > { %618 = vsyncadd (%p715_p8), %s206_s5, 4294967168  ;;  %s427_s25 = sshll.u32 %s760_s3, 7  ;;  %s216_s6 = scalar_lea.sflag [#allocation6], %s760_s3 }
  0x25   : > { %s774_s8 = scalar_lea.vmem [#allocation5], %s427_s25 }
  0x26   : > { %620 = dma.done.wait (%p715_p8), %s216_s6, 2048  }
  0x27   : > { %622 = vsyncadd (%p715_p8), %s216_s6, 4294965248  ;;  %v263_v0 = vld [vmem:[%s774_s8 + $0x78] sm:$0xff]  ;;  %v262_v1 = vld [vmem:[%s774_s8 + $0x70] sm:$0xff]  ;;  %s430_s21 = sshll.u32 %s641_s12, 3  ;;  %s245_s20 = scalar_lea.vmem [#allocation7], %s426_s4 }
  0x28   : > { %264 = vmatpush.xpose.msra.mxu0 %v263_v0  ;;  %v261_v2 = vld [vmem:[%s774_s8 + $0x68] sm:$0xff]  ;;  %v260_v3 = vld [vmem:[%s774_s8 + $0x60] sm:$0xff]  ;;  %v259_v4 = vld [vmem:[%s774_s8 + $0x58] sm:$0xff]  ;;  %s299_s18 = scalar_lea.hbm %s839_s2, %s430_s21  ;;  %s301_s26 = sshll.u32 %s245_s20, 4  ;;  %s302_s26 = int_to_ptr.vmem [resolvable:$true] %s301_s26 }
  0x29   : > { %v258_v5 = vld [vmem:[%s774_s8 + $0x50] sm:$0xff]  ;;  %v257_v6 = vld [vmem:[%s774_s8 + $0x48] sm:$0xff]  ;;  %v256_v7 = vld [vmem:[%s774_s8 + $0x40] sm:$0xff]  ;;  %s303_s19 = sshll.u32 %s299_s18, 4  ;;  %s287_s27 = scalar_lea.sflag [#allocation4], %s760_s3  ;;  %s304_s19 = int_to_ptr.hbm [resolvable:$true] %s303_s19 }
  0x2a   : > { %v255_v8 = vld [vmem:[%s774_s8 + $0x38] sm:$0xff]  ;;  %v254_v9 = vld [vmem:[%s774_s8 + $0x30] sm:$0xff]  ;;  %v253_v10 = vld [vmem:[%s774_s8 + $0x28] sm:$0xff]  ;;  %s577_s28 = sshra.s32 %s304_s19, 4  ;;  %s583_s5 = scalar_lea.hbm %s839_s2, 16  ;;  %s578_s28 = int_to_ptr.hbm [resolvable:$true] %s577_s28 }
  0x2b   : > { %v252_v11 = vld [vmem:[%s774_s8 + $0x20] sm:$0xff]  ;;  %v251_v12 = vld [vmem:[%s774_s8 + $0x18] sm:$0xff]  ;;  %v250_v13 = vld [vmem:[%s774_s8 + $0x10] sm:$0xff]  ;;  %s579_s29 = scalar_lea.hbm %s578_s28, 8  ;;  %p584_p7 = scmp.lt.s32.totalorder %s578_s28, %s839_s2 }
  0x2c   : > { %265 = vmatpush.xpose.msra.mxu0 %v262_v1  ;;  %v249_v14 = vld [vmem:[%s774_s8 + $0x8] sm:$0xff]  ;;  %v248_v15 = vld [vmem:[%s774_s8] sm:$0xff]  ;;  %v247_v16 = vld [vmem:[%s766_s7] sm:$0xff]  ;;  %p580_p4 = scmp.ne.s32.totalorder %s578_s28, %s579_s29  ;;  %p585_p8 = scmp.lt.s32.totalorder %s583_s5, %s579_s29 }
  0x2e   : > { %p581_p5 = pnand %p580_p4, %p719_p9  ;;  %p586_p10 = por %p585_p8, %p584_p7 }
  0x30   : > { %266 = vmatpush.xpose.msra.mxu0 %v261_v2  ;;  %p582_p6 = pneg %p581_p5 }
  0x32   : > { %p587_p13 = pnand %p586_p10, %p582_p6 }
  0x34   : > { %267 = vmatpush.xpose.msra.mxu0 %v260_v3 }
  0x38   : > { %268 = vmatpush.xpose.msra.mxu0 %v259_v4 }
  0x3c   : > { %269 = vmatpush.xpose.msra.mxu0 %v258_v5 }
  0x40   : > { %270 = vmatpush.xpose.msra.mxu0 %v257_v6 }
  0x44   : > { %271 = vmatpush.xpose.msra.mxu0 %v256_v7 }
  0x48   : > { %272 = vmatpush.xpose.msra.mxu0 %v255_v8 }
  0x4c   : > { %273 = vmatpush.xpose.msra.mxu0 %v254_v9 }
  0x50   : > { %274 = vmatpush.xpose.msra.mxu0 %v253_v10 }
  0x54   : > { %275 = vmatpush.xpose.msra.mxu0 %v252_v11 }
  0x58   : > { %276 = vmatpush.xpose.msra.mxu0 %v251_v12 }
  0x5c   : > { %277 = vmatpush.xpose.msra.mxu0 %v250_v13 }
  0x60   : > { %278 = vmatpush.xpose.msra.mxu0 %v249_v14 }
  0x64   : > { %279 = vmatpush.xpose.msra.mxu0 %v248_v15 }
  0x67   : > { %280 = vmatmul.f32.vlgmr.msra.gmra.mxu0 %v247_v16 }
  0xe4   : > { %v281_v17 = vpop.f32.mrf.mxu0 }
  0xe5   : > { %v284_v18 = vsub.f32 0.0, %v281_v17 }
  0xe7   : > { %285 = vst [vmem:[%s245_s20] sm:$0xff] %v284_v18 }
  0xe8   : > { %590 = shalt.err (!%p587_p13)
}
  0xe9   : > { %438 = dma.vmem_to_hbm [thread:$0]  (%p719_p9), %s302_s26, 128, %s304_s19, %s287_s27  }
  0xea PF: > { %s315_s3 = sand.u32 1, %s629_s9   ;;  %p448_p0 = pnand %p419_p12, %p726_p11 }
  0xeb   : > { %s316_s25 = scalar_lea.sflag [#allocation4], %s315_s3 }
  0xec   : > { %p449_p1 = pneg %p448_p0 }
  0xee   : > { %624 = dma.done.wait (%p449_p1), %s316_s25, 128  }
  0xef   : > { %626 = vsyncadd (%p449_p1), %s316_s25, 4294967168  ;;  %s21_s14 = sadd.s32 1, %s649_s14   ;;  %s845_s9 = smov %s633_s10 }
  0xf0   : > { %p18_p2 = scmp.ge.s32.totalorder %s21_s14, 4   ;;  %s846_s10 = smov %s637_s11 }
  0xf1   : > { %s847_s11 = smov %s724_s23  ;;  %s848_s12 = smov %s645_s13 }
  0xf2   : > { %s849_s13 = smov %s851_s17  ;;  %20 = sbr.rel (!%p18_p2) target bundleno = 8 (0x8), region = 86 }
  0xf7   :  { %322 = vsyncpa [#allocation3], 1 }
  0xf8   :  { %324 = vsyncpa [#allocation3 + $0x1], 1 }
  0xf9   :  { %325 = vsyncpa [#allocation6], 1 }
  0xfa   :  { %327 = vsyncpa [#allocation6 + $0x1], 1 }
  0xfb   :  { %328 = vsyncpa [#allocation4], 1 }
  0xfc   :  { %330 = vsyncpa [#allocation4 + $0x1], 1 }

</bundles_post_ra>
